<compile_context>
chip_gen: v6e
topology: v6e:2x2x1
jax: 0.10.0
libtpu: 0.0.40
codegen_flags: <defaults>
</compile_context>

<pallas_src>
import math

import jax
import jax.numpy as jnp
from jax.experimental import pallas as pl
from jax.experimental.pallas import tpu as pltpu

_LANE = 128
_BN_EPS = 1e-5


# ----------------------------- small helpers --------------------------------
def _round_up(n, m):
    return ((n + m - 1) // m) * m


def _pad_cols(a, cols):
    return jnp.pad(a, ((0, 0), (0, cols - a.shape[1])))


def _pad_mat(a, rows, cols):
    return jnp.pad(a, ((0, rows - a.shape[0]), (0, cols - a.shape[1])))


def _pad_row(v, cols):
    return jnp.pad(v.astype(jnp.float32), (0, cols - v.shape[0])).reshape(1, cols)


def _uniform01(shape):
    """Uniform [0,1) from the TPU hardware PRNG (call pltpu.prng_seed first)."""
    bits = pltpu.bitcast(pltpu.prng_random_bits(shape), jnp.uint32)
    return (bits >> jnp.uint32(8)).astype(jnp.float32) * (1.0 / float(1 << 24))


# --------------------------- fused WideDeep kernel ---------------------------
def _make_fused_kernel(n_deep, deep_dropout, head_dropout, eps):
    """Builds the single fused kernel for a stack of `n_deep` deep layers."""
    any_dropout = (deep_dropout > 0.0) or (head_dropout > 0.0)

    def _dropout(y, p):
        keep = _uniform01(y.shape) >= p
        return jnp.where(keep, y * (1.0 / (1.0 - p)), 0.0)

    def _linear_relu_bn(x, w_ref, b_ref, g_ref, bt_ref):
        # MXU matmul at the weights' dtype (bf16 or f32), f32 accumulation.
        z = jnp.dot(x.astype(w_ref.dtype), w_ref[...],
                    preferred_element_type=jnp.float32) + b_ref[...]
        z = jnp.maximum(z, 0.0)
        # BatchNorm1d, training mode: batch mean / biased batch variance (exact,
        # the whole batch is resident in this single fused step).
        mean = jnp.mean(z, axis=0, keepdims=True)
        c = z - mean
        var = jnp.mean(c * c, axis=0, keepdims=True)
        scale = g_ref[...] * jax.lax.rsqrt(var + eps)      # fold gamma * inv_std
        return c * scale + bt_ref[...]

    def kernel(seed_ref, deep_x_ref, wide_x_ref, *refs):
        out_ref = refs[-1]
        p = refs[:-1]

        if any_dropout:        # static Python branch; dead code when both p == 0
            pltpu.prng_seed(seed_ref[0])

        # ---- Deep stack (every layer: Linear -> ReLU -> BN -> Dropout) ----
        x = deep_x_ref[...]
        k = 0
        for _ in range(n_deep):
            x = _linear_relu_bn(x, p[k], p[k + 1], p[k + 2], p[k + 3])
            k += 4
            if deep_dropout > 0.0:
                x = _dropout(x, deep_dropout)

        # ---- Wide branch (Linear -> ReLU -> BN) ----
        wide = _linear_relu_bn(wide_x_ref[...], p[k], p[k + 1], p[k + 2], p[k + 3])
        k += 4

        # ---- Head: Linear -> ReLU -> Dropout -> last Linear ----
        # Head weight is pre-split into wide-rows / deep-rows; summing the two
        # partial matmuls avoids an in-kernel feature concat.
        wh_w, wh_d, bh, wl_row, bl = p[k], p[k + 1], p[k + 2], p[k + 3], p[k + 4]
        h = (jnp.dot(wide.astype(wh_w.dtype), wh_w[...],
                     preferred_element_type=jnp.float32)
             + jnp.dot(x.astype(wh_d.dtype), wh_d[...],
                       preferred_element_type=jnp.float32)
             + bh[...])
        h = jnp.maximum(h, 0.0)
        if head_dropout > 0.0:
            h = _dropout(h, head_dropout)
        # Final (H, 1) projection: VPU multiply + lane reduce instead of a matmul
        # against a zero-padded (H, 128) weight.
        out = jnp.sum(h * wl_row[...], axis=-1, keepdims=True) + bl[...]
        out_ref[...] = out.astype(out_ref.dtype)

    return kernel


# ------------------------------ param prep -----------------------------------
def prepare_params(params, compute_dtype=jnp.bfloat16):
    """Pad / cast all weights ONCE (lane-dense, multiple-of-128 feature dims)."""
    def prep_layer(w, b, g, bt):
        din, dout = w.shape
        dp, op = _round_up(din, _LANE), _round_up(dout, _LANE)
        return (_pad_mat(w, dp, op).astype(compute_dtype),
                _pad_row(b, op), _pad_row(g, op), _pad_row(bt, op))

    prepared = {
        "compute_dtype": compute_dtype,
        "user_embed": params["user_embed"],
        "item_embed": params["item_embed"],
        "user_crossed": params["user_crossed"],
        "item_crossed": params["item_crossed"],
        "deep": [prep_layer(*layer) for layer in params["deep_layers"]],
        "wide": prep_layer(*params["wide"]),
    }

    wide_out = params["wide"][0].shape[1]
    deep_out = params["deep_layers"][-1][0].shape[1]
    wh, bh, wl, bl = params["wh"], params["bh"], params["wl"], params["bl"]
    dim_head = wh.shape[1]
    ow_p = _round_up(wide_out, _LANE)
    od_p = _round_up(deep_out, _LANE)
    h_p = _round_up(dim_head, _LANE)
    prepared["head"] = (
        _pad_mat(wh[:wide_out], ow_p, h_p).astype(compute_dtype),   # wide rows
        _pad_mat(wh[wide_out:], od_p, h_p).astype(compute_dtype),   # deep rows
        _pad_row(bh, h_p),
        _pad_row(wl[:, 0], h_p),                                    # last-layer weight as a lane row
        jnp.reshape(bl.astype(jnp.float32), (1, 1)),
    )
    return prepared


# ------------------------------ forward pass ----------------------------------
def widedeep_forward(prepared, wide_part, continuous_part, cat_part, users, items,
                     *, deep_dropout=0.0, head_dropout=0.0, seed=0):
    cdt = prepared["compute_dtype"]

    # EmbedModel: tiny-table row gathers + crossed feature (wrapper-side per review).
    ue = jnp.take(prepared["user_embed"], users, axis=0)
    ie = jnp.take(prepared["item_embed"], items, axis=0)
    cu = jnp.take(prepared["user_crossed"], users, axis=0)
    ci = jnp.take(prepared["item_crossed"], items, axis=0)
    cross = jnp.sum(cu * ci, axis=-1, keepdims=True)

    deep_x = jnp.concatenate([cat_part, continuous_part, ue, ie], axis=-1)
    wide_x = jnp.concatenate([wide_part, cu, ci, cross], axis=-1)

    B = deep_x.shape[0]
    dd_pad = prepared["deep"][0][0].shape[0]
    dw_pad = prepared["wide"][0].shape[0]
    deep_x_p = _pad_cols(deep_x, dd_pad).astype(cdt)
    wide_x_p = _pad_cols(wide_x, dw_pad).astype(cdt)

    flat = []
    for layer in prepared["deep"]:
        flat += list(layer)
    flat += list(prepared["wide"])
    flat += list(prepared["head"])

    all_inputs = [deep_x_p, wide_x_p] + flat
    total_bytes = sum(int(a.size) * a.dtype.itemsize for a in all_inputs) + B * 4
    # Everything (weights + whole-batch activations) is VMEM-resident in this call.
    # TODO(synk): tile layers / batch (two-pass BN) once this exceeds the VMEM budget.
    assert total_bytes < 24 * 1024 * 1024, "fused WideDeep exceeds single-step VMEM budget"
    vmem_limit = int(min(max(4 * total_bytes, 16 * 1024 * 1024), 48 * 1024 * 1024))

    kernel = _make_fused_kernel(len(prepared["deep"]), float(deep_dropout),
                                float(head_dropout), _BN_EPS)
    seed_arr = jnp.asarray([seed], jnp.int32)

    in_specs = [pl.BlockSpec(a.shape, lambda i, s: (0, 0)) for a in all_inputs]

    out = pl.pallas_call(
        kernel,
        out_shape=jax.ShapeDtypeStruct((B, 1), jnp.float32),
        grid_spec=pltpu.PrefetchScalarGridSpec(
            num_scalar_prefetch=1,                       # dropout seed -> SMEM
            grid=(1,),                                   # single fused step
            in_specs=in_specs,
            out_specs=pl.BlockSpec((B, 1), lambda i, s: (0, 0)),
        ),
        compiler_params=pltpu.CompilerParams(
            dimension_semantics=("arbitrary",),
            vmem_limit_bytes=vmem_limit,
        ),
    )(seed_arr, *all_inputs)
    return out


# ------------------------------- reference ------------------------------------
def reference_forward(params, wide_part, continuous_part, cat_part, users, items,
                      *, compute_dtype=jnp.float32):
    """Pure-JAX replica of WideDeep.forward (dropout p=0 -> identity).

    Matmul operands are cast to `compute_dtype` exactly like the kernel, so the
    comparison tolerance is independent of bf16 operand rounding.
    """
    def mm(a, w):
        return jnp.dot(a.astype(compute_dtype), w.astype(compute_dtype),
                       preferred_element_type=jnp.float32)

    def lin_relu_bn(x, w, b, g, bt):
        z = jnp.maximum(mm(x, w) + b[None, :], 0.0)
        mean = jnp.mean(z, axis=0, keepdims=True)
        c = z - mean
        var = jnp.mean(c * c, axis=0, keepdims=True)
        return c * (g[None, :] * jax.lax.rsqrt(var + _BN_EPS)) + bt[None, :]

    ue = params["user_embed"][users]
    ie = params["item_embed"][items]
    cu = params["user_crossed"][users]
    ci = params["item_crossed"][items]
    cross = jnp.sum(cu * ci, axis=-1, keepdims=True)

    x = jnp.concatenate([cat_part, continuous_part, ue, ie], axis=-1)
    for (w, b, g, bt) in params["deep_layers"]:
        x = lin_relu_bn(x, w, b, g, bt)

    wide_x = jnp.concatenate([wide_part, cu, ci, cross], axis=-1)
    out_wide = lin_relu_bn(wide_x, *params["wide"])

    head_x = jnp.concatenate([out_wide, x], axis=-1)
    h = jnp.maximum(mm(head_x, params["wh"]) + params["bh"][None, :], 0.0)
    return (jnp.sum(h * params["wl"][:, 0][None, :], axis=-1, keepdims=True)
            + params["bl"][None, :])


# ------------------------------ init / demo -----------------------------------
def init_params(key, cfg):
    """PyTorch-style init: Linear U(-1/sqrt(fan_in), ...); Embedding N(0,1); BN 1/0."""
    def linear_init(k, fan_in, fan_out):
        kw, kb = jax.random.split(k)
        bound = 1.0 / math.sqrt(fan_in)
        w = jax.random.uniform(kw, (fan_in, fan_out), jnp.float32, -bound, bound)
        b = jax.random.uniform(kb, (fan_out,), jnp.float32, -bound, bound)
        return w, b

    deep_in = (cfg["size_cat_features"] + cfg["size_continuous_features"]
               + cfg["user_embed"] + cfg["item_embed"])
    dims = [deep_in] + list(cfg["hidden_layers"]) + [cfg["deep_out_dim"]]
    n_keys = 4 + (len(dims) - 1) + 3
    keys = iter(jax.random.split(key, n_keys))

    p = {}
    p["user_embed"] = jax.random.normal(next(keys), (cfg["cnt_users"], cfg["user_embed"]), jnp.float32)
    p["item_embed"] = jax.random.normal(next(keys), (cfg["cnt_items"], cfg["item_embed"]), jnp.float32)
    p["user_crossed"] = jax.random.normal(next(keys), (cfg["cnt_users"], cfg["crossed_embed"]), jnp.float32)
    p["item_crossed"] = jax.random.normal(next(keys), (cfg["cnt_items"], cfg["crossed_embed"]), jnp.float32)

    p["deep_layers"] = []
    for a, o in zip(dims[:-1], dims[1:]):
        w, b = linear_init(next(keys), a, o)
        p["deep_layers"].append((w, b, jnp.ones((o,), jnp.float32), jnp.zeros((o,), jnp.float32)))

    wide_in = cfg["size_wide_features"] + 2 * cfg["crossed_embed"] + 1
    w, b = linear_init(next(keys), wide_in, cfg["wide_out_dim"])
    p["wide"] = (w, b, jnp.ones((cfg["wide_out_dim"],), jnp.float32),
                 jnp.zeros((cfg["wide_out_dim"],), jnp.float32))

    head_in = cfg["wide_out_dim"] + cfg["deep_out_dim"]
    p["wh"], p["bh"] = linear_init(next(keys), head_in, cfg["dim_head"])
    p["wl"], p["bl"] = linear_init(next(keys), cfg["dim_head"], 1)
    return p


if __name__ == "__main__":
    B = 8
    cfg = dict(
        dim_head=16, deep_out_dim=8, hidden_layers=[16, 12],
        size_wide_features=6, size_continuous_features=7, size_cat_features=5,
        wide_out_dim=4, head_dropout=0.0, deep_dropout=0.0,
        cnt_users=32, cnt_items=40, user_embed=8, item_embed=8, crossed_embed=4,
    )

    key = jax.random.PRNGKey(0)
    kp, k1, k2, k3, k4, k5 = jax.random.split(key, 6)
    params = init_params(kp, cfg)
    compute_dtype = jnp.bfloat16                    # native MXU dtype on v5e/v6e/v7x
    prepared = prepare_params(params, compute_dtype=compute_dtype)

    wide_part = jax.random.normal(k1, (B, cfg["size_wide_features"]), jnp.float32)
    continuous_part = jax.random.normal(k2, (B, cfg["size_continuous_features"]), jnp.float32)
    cat_part = jax.random.normal(k3, (B, cfg["size_cat_features"]), jnp.float32)
    users = jax.random.randint(k4, (B,), 0, cfg["cnt_users"], jnp.int32)
    items = jax.random.randint(k5, (B,), 0, cfg["cnt_items"], jnp.int32)

    out = widedeep_forward(prepared, wide_part, continuous_part, cat_part, users, items,
                           deep_dropout=cfg["deep_dropout"],
                           head_dropout=cfg["head_dropout"], seed=0)
    out = jax.block_until_ready(out)

    ref = reference_forward(params, wide_part, continuous_part, cat_part, users, items,
                            compute_dtype=compute_dtype)
    assert out.shape == (B, 1), out.shape
    assert jnp.allclose(out, ref, atol=5e-3, rtol=5e-3), (out, ref)

    print("KERNEL_OK")
</pallas_src>

<mosaic_0001>
module attributes {stable_mosaic.version = 11 : i64} {
  func.func @kernel(%arg0: i32, %arg1: memref<1xi32, #tpu.memory_space<smem>>, %arg2: memref<8x128xbf16, #tpu.memory_space<vmem>>, %arg3: memref<8x128xbf16, #tpu.memory_space<vmem>>, %arg4: memref<128x128xbf16, #tpu.memory_space<vmem>>, %arg5: memref<1x128xf32, #tpu.memory_space<vmem>>, %arg6: memref<1x128xf32, #tpu.memory_space<vmem>>, %arg7: memref<1x128xf32, #tpu.memory_space<vmem>>, %arg8: memref<128x128xbf16, #tpu.memory_space<vmem>>, %arg9: memref<1x128xf32, #tpu.memory_space<vmem>>, %arg10: memref<1x128xf32, #tpu.memory_space<vmem>>, %arg11: memref<1x128xf32, #tpu.memory_space<vmem>>, %arg12: memref<128x128xbf16, #tpu.memory_space<vmem>>, %arg13: memref<1x128xf32, #tpu.memory_space<vmem>>, %arg14: memref<1x128xf32, #tpu.memory_space<vmem>>, %arg15: memref<1x128xf32, #tpu.memory_space<vmem>>, %arg16: memref<128x128xbf16, #tpu.memory_space<vmem>>, %arg17: memref<1x128xf32, #tpu.memory_space<vmem>>, %arg18: memref<1x128xf32, #tpu.memory_space<vmem>>, %arg19: memref<1x128xf32, #tpu.memory_space<vmem>>, %arg20: memref<128x128xbf16, #tpu.memory_space<vmem>>, %arg21: memref<128x128xbf16, #tpu.memory_space<vmem>>, %arg22: memref<1x128xf32, #tpu.memory_space<vmem>>, %arg23: memref<1x128xf32, #tpu.memory_space<vmem>>, %arg24: memref<1x1xf32, #tpu.memory_space<vmem>>, %arg25: memref<8x1xf32, #tpu.memory_space<vmem>>) attributes {dimension_semantics = [#tpu.dimension_semantics<arbitrary>], iteration_bounds = array<i64: 1>, scalar_prefetch = 1 : i64, scratch_operands = 0 : i64, tpu.core_type = #tpu.core_type<tc>, window_params = [{pipeline_mode = #tpu.pipeline_mode<synchronous>, transform_indices = @transform_0, window_bounds = array<i64: 8, 128>}, {pipeline_mode = #tpu.pipeline_mode<synchronous>, transform_indices = @transform_1, window_bounds = array<i64: 8, 128>}, {pipeline_mode = #tpu.pipeline_mode<synchronous>, transform_indices = @transform_2, window_bounds = array<i64: 128, 128>}, {pipeline_mode = #tpu.pipeline_mode<synchronous>, transform_indices = @transform_3, window_bounds = array<i64: 1, 128>}, {pipeline_mode = #tpu.pipeline_mode<synchronous>, transform_indices = @transform_4, window_bounds = array<i64: 1, 128>}, {pipeline_mode = #tpu.pipeline_mode<synchronous>, transform_indices = @transform_5, window_bounds = array<i64: 1, 128>}, {pipeline_mode = #tpu.pipeline_mode<synchronous>, transform_indices = @transform_6, window_bounds = array<i64: 128, 128>}, {pipeline_mode = #tpu.pipeline_mode<synchronous>, transform_indices = @transform_7, window_bounds = array<i64: 1, 128>}, {pipeline_mode = #tpu.pipeline_mode<synchronous>, transform_indices = @transform_8, window_bounds = array<i64: 1, 128>}, {pipeline_mode = #tpu.pipeline_mode<synchronous>, transform_indices = @transform_9, window_bounds = array<i64: 1, 128>}, {pipeline_mode = #tpu.pipeline_mode<synchronous>, transform_indices = @transform_10, window_bounds = array<i64: 128, 128>}, {pipeline_mode = #tpu.pipeline_mode<synchronous>, transform_indices = @transform_11, window_bounds = array<i64: 1, 128>}, {pipeline_mode = #tpu.pipeline_mode<synchronous>, transform_indices = @transform_12, window_bounds = array<i64: 1, 128>}, {pipeline_mode = #tpu.pipeline_mode<synchronous>, transform_indices = @transform_13, window_bounds = array<i64: 1, 128>}, {pipeline_mode = #tpu.pipeline_mode<synchronous>, transform_indices = @transform_14, window_bounds = array<i64: 128, 128>}, {pipeline_mode = #tpu.pipeline_mode<synchronous>, transform_indices = @transform_15, window_bounds = array<i64: 1, 128>}, {pipeline_mode = #tpu.pipeline_mode<synchronous>, transform_indices = @transform_16, window_bounds = array<i64: 1, 128>}, {pipeline_mode = #tpu.pipeline_mode<synchronous>, transform_indices = @transform_17, window_bounds = array<i64: 1, 128>}, {pipeline_mode = #tpu.pipeline_mode<synchronous>, transform_indices = @transform_18, window_bounds = array<i64: 128, 128>}, {pipeline_mode = #tpu.pipeline_mode<synchronous>, transform_indices = @transform_19, window_bounds = array<i64: 128, 128>}, {pipeline_mode = #tpu.pipeline_mode<synchronous>, transform_indices = @transform_20, window_bounds = array<i64: 1, 128>}, {pipeline_mode = #tpu.pipeline_mode<synchronous>, transform_indices = @transform_21, window_bounds = array<i64: 1, 128>}, {pipeline_mode = #tpu.pipeline_mode<synchronous>, transform_indices = @transform_22, window_bounds = array<i64: 1, 1>}, {pipeline_mode = #tpu.pipeline_mode<synchronous>, transform_indices = @transform_23, window_bounds = array<i64: 8, 1>}]} {
    %c0 = arith.constant 0 : index
    %c0_0 = arith.constant 0 : index
    %0 = vector.load %arg2[%c0, %c0_0] : memref<8x128xbf16, #tpu.memory_space<vmem>>, vector<8x128xbf16>
    %c0_1 = arith.constant 0 : index
    %c0_2 = arith.constant 0 : index
    %1 = vector.load %arg4[%c0_1, %c0_2] : memref<128x128xbf16, #tpu.memory_space<vmem>>, vector<128x128xbf16>
    %cst = arith.constant dense<0.000000e+00> : vector<8x128xf32>
    %2 = tpu.matmul %0, %1, %cst {dimension_numbers = #tpu.dot_dimension_numbers<[1], [0], [0], [1], [0, 0, 1, 1], [], []>} : vector<8x128xbf16>, vector<128x128xbf16>, vector<8x128xf32> -> vector<8x128xf32>
    %c0_3 = arith.constant 0 : index
    %c0_4 = arith.constant 0 : index
    %3 = vector.load %arg5[%c0_3, %c0_4] : memref<1x128xf32, #tpu.memory_space<vmem>>, vector<1x128xf32>
    %4 = vector.broadcast %3 : vector<1x128xf32> to vector<8x128xf32>
    %5 = arith.addf %2, %4 : vector<8x128xf32>
    %cst_5 = arith.constant 0.000000e+00 : f32
    %6 = vector.broadcast %cst_5 : f32 to vector<8x128xf32>
    %7 = arith.maximumf %5, %6 : vector<8x128xf32>
    %cst_6 = arith.constant dense<0.000000e+00> : vector<128xf32>
    %8 = vector.multi_reduction <add>, %7, %cst_6 [0] : vector<8x128xf32> to vector<128xf32>
    %9 = vector.shape_cast %8 : vector<128xf32> to vector<1x128xf32>
    %cst_7 = arith.constant 8.000000e+00 : f32
    %10 = vector.broadcast %cst_7 : f32 to vector<1x128xf32>
    %11 = arith.divf %9, %10 : vector<1x128xf32>
    %12 = vector.broadcast %11 : vector<1x128xf32> to vector<8x128xf32>
    %13 = arith.subf %7, %12 : vector<8x128xf32>
    %14 = arith.mulf %13, %13 : vector<8x128xf32>
    %cst_8 = arith.constant dense<0.000000e+00> : vector<128xf32>
    %15 = vector.multi_reduction <add>, %14, %cst_8 [0] : vector<8x128xf32> to vector<128xf32>
    %16 = vector.shape_cast %15 : vector<128xf32> to vector<1x128xf32>
    %cst_9 = arith.constant 8.000000e+00 : f32
    %17 = vector.broadcast %cst_9 : f32 to vector<1x128xf32>
    %18 = arith.divf %16, %17 : vector<1x128xf32>
    %c0_10 = arith.constant 0 : index
    %c0_11 = arith.constant 0 : index
    %19 = vector.load %arg6[%c0_10, %c0_11] : memref<1x128xf32, #tpu.memory_space<vmem>>, vector<1x128xf32>
    %cst_12 = arith.constant 9.99999974E-6 : f32
    %20 = vector.broadcast %cst_12 : f32 to vector<1x128xf32>
    %21 = arith.addf %18, %20 : vector<1x128xf32>
    %22 = math.rsqrt %21 : vector<1x128xf32>
    %23 = arith.mulf %19, %22 : vector<1x128xf32>
    %24 = vector.broadcast %23 : vector<1x128xf32> to vector<8x128xf32>
    %25 = arith.mulf %13, %24 : vector<8x128xf32>
    %c0_13 = arith.constant 0 : index
    %c0_14 = arith.constant 0 : index
    %26 = vector.load %arg7[%c0_13, %c0_14] : memref<1x128xf32, #tpu.memory_space<vmem>>, vector<1x128xf32>
    %27 = vector.broadcast %26 : vector<1x128xf32> to vector<8x128xf32>
    %28 = arith.addf %25, %27 : vector<8x128xf32>
    %29 = arith.truncf %28 : vector<8x128xf32> to vector<8x128xbf16>
    %c0_15 = arith.constant 0 : index
    %c0_16 = arith.constant 0 : index
    %30 = vector.load %arg8[%c0_15, %c0_16] : memref<128x128xbf16, #tpu.memory_space<vmem>>, vector<128x128xbf16>
    %cst_17 = arith.constant dense<0.000000e+00> : vector<8x128xf32>
    %31 = tpu.matmul %29, %30, %cst_17 {dimension_numbers = #tpu.dot_dimension_numbers<[1], [0], [0], [1], [0, 0, 1, 1], [], []>} : vector<8x128xbf16>, vector<128x128xbf16>, vector<8x128xf32> -> vector<8x128xf32>
    %c0_18 = arith.constant 0 : index
    %c0_19 = arith.constant 0 : index
    %32 = vector.load %arg9[%c0_18, %c0_19] : memref<1x128xf32, #tpu.memory_space<vmem>>, vector<1x128xf32>
    %33 = vector.broadcast %32 : vector<1x128xf32> to vector<8x128xf32>
    %34 = arith.addf %31, %33 : vector<8x128xf32>
    %cst_20 = arith.constant 0.000000e+00 : f32
    %35 = vector.broadcast %cst_20 : f32 to vector<8x128xf32>
    %36 = arith.maximumf %34, %35 : vector<8x128xf32>
    %cst_21 = arith.constant dense<0.000000e+00> : vector<128xf32>
    %37 = vector.multi_reduction <add>, %36, %cst_21 [0] : vector<8x128xf32> to vector<128xf32>
    %38 = vector.shape_cast %37 : vector<128xf32> to vector<1x128xf32>
    %cst_22 = arith.constant 8.000000e+00 : f32
    %39 = vector.broadcast %cst_22 : f32 to vector<1x128xf32>
    %40 = arith.divf %38, %39 : vector<1x128xf32>
    %41 = vector.broadcast %40 : vector<1x128xf32> to vector<8x128xf32>
    %42 = arith.subf %36, %41 : vector<8x128xf32>
    %43 = arith.mulf %42, %42 : vector<8x128xf32>
    %cst_23 = arith.constant dense<0.000000e+00> : vector<128xf32>
    %44 = vector.multi_reduction <add>, %43, %cst_23 [0] : vector<8x128xf32> to vector<128xf32>
    %45 = vector.shape_cast %44 : vector<128xf32> to vector<1x128xf32>
    %cst_24 = arith.constant 8.000000e+00 : f32
    %46 = vector.broadcast %cst_24 : f32 to vector<1x128xf32>
    %47 = arith.divf %45, %46 : vector<1x128xf32>
    %c0_25 = arith.constant 0 : index
    %c0_26 = arith.constant 0 : index
    %48 = vector.load %arg10[%c0_25, %c0_26] : memref<1x128xf32, #tpu.memory_space<vmem>>, vector<1x128xf32>
    %cst_27 = arith.constant 9.99999974E-6 : f32
    %49 = vector.broadcast %cst_27 : f32 to vector<1x128xf32>
    %50 = arith.addf %47, %49 : vector<1x128xf32>
    %51 = math.rsqrt %50 : vector<1x128xf32>
    %52 = arith.mulf %48, %51 : vector<1x128xf32>
    %53 = vector.broadcast %52 : vector<1x128xf32> to vector<8x128xf32>
    %54 = arith.mulf %42, %53 : vector<8x128xf32>
    %c0_28 = arith.constant 0 : index
    %c0_29 = arith.constant 0 : index
    %55 = vector.load %arg11[%c0_28, %c0_29] : memref<1x128xf32, #tpu.memory_space<vmem>>, vector<1x128xf32>
    %56 = vector.broadcast %55 : vector<1x128xf32> to vector<8x128xf32>
    %57 = arith.addf %54, %56 : vector<8x128xf32>
    %58 = arith.truncf %57 : vector<8x128xf32> to vector<8x128xbf16>
    %c0_30 = arith.constant 0 : index
    %c0_31 = arith.constant 0 : index
    %59 = vector.load %arg12[%c0_30, %c0_31] : memref<128x128xbf16, #tpu.memory_space<vmem>>, vector<128x128xbf16>
    %cst_32 = arith.constant dense<0.000000e+00> : vector<8x128xf32>
    %60 = tpu.matmul %58, %59, %cst_32 {dimension_numbers = #tpu.dot_dimension_numbers<[1], [0], [0], [1], [0, 0, 1, 1], [], []>} : vector<8x128xbf16>, vector<128x128xbf16>, vector<8x128xf32> -> vector<8x128xf32>
    %c0_33 = arith.constant 0 : index
    %c0_34 = arith.constant 0 : index
    %61 = vector.load %arg13[%c0_33, %c0_34] : memref<1x128xf32, #tpu.memory_space<vmem>>, vector<1x128xf32>
    %62 = vector.broadcast %61 : vector<1x128xf32> to vector<8x128xf32>
    %63 = arith.addf %60, %62 : vector<8x128xf32>
    %cst_35 = arith.constant 0.000000e+00 : f32
    %64 = vector.broadcast %cst_35 : f32 to vector<8x128xf32>
    %65 = arith.maximumf %63, %64 : vector<8x128xf32>
    %cst_36 = arith.constant dense<0.000000e+00> : vector<128xf32>
    %66 = vector.multi_reduction <add>, %65, %cst_36 [0] : vector<8x128xf32> to vector<128xf32>
    %67 = vector.shape_cast %66 : vector<128xf32> to vector<1x128xf32>
    %cst_37 = arith.constant 8.000000e+00 : f32
    %68 = vector.broadcast %cst_37 : f32 to vector<1x128xf32>
    %69 = arith.divf %67, %68 : vector<1x128xf32>
    %70 = vector.broadcast %69 : vector<1x128xf32> to vector<8x128xf32>
    %71 = arith.subf %65, %70 : vector<8x128xf32>
    %72 = arith.mulf %71, %71 : vector<8x128xf32>
    %cst_38 = arith.constant dense<0.000000e+00> : vector<128xf32>
    %73 = vector.multi_reduction <add>, %72, %cst_38 [0] : vector<8x128xf32> to vector<128xf32>
    %74 = vector.shape_cast %73 : vector<128xf32> to vector<1x128xf32>
    %cst_39 = arith.constant 8.000000e+00 : f32
    %75 = vector.broadcast %cst_39 : f32 to vector<1x128xf32>
    %76 = arith.divf %74, %75 : vector<1x128xf32>
    %c0_40 = arith.constant 0 : index
    %c0_41 = arith.constant 0 : index
    %77 = vector.load %arg14[%c0_40, %c0_41] : memref<1x128xf32, #tpu.memory_space<vmem>>, vector<1x128xf32>
    %cst_42 = arith.constant 9.99999974E-6 : f32
    %78 = vector.broadcast %cst_42 : f32 to vector<1x128xf32>
    %79 = arith.addf %76, %78 : vector<1x128xf32>
    %80 = math.rsqrt %79 : vector<1x128xf32>
    %81 = arith.mulf %77, %80 : vector<1x128xf32>
    %82 = vector.broadcast %81 : vector<1x128xf32> to vector<8x128xf32>
    %83 = arith.mulf %71, %82 : vector<8x128xf32>
    %c0_43 = arith.constant 0 : index
    %c0_44 = arith.constant 0 : index
    %84 = vector.load %arg15[%c0_43, %c0_44] : memref<1x128xf32, #tpu.memory_space<vmem>>, vector<1x128xf32>
    %85 = vector.broadcast %84 : vector<1x128xf32> to vector<8x128xf32>
    %86 = arith.addf %83, %85 : vector<8x128xf32>
    %c0_45 = arith.constant 0 : index
    %c0_46 = arith.constant 0 : index
    %87 = vector.load %arg3[%c0_45, %c0_46] : memref<8x128xbf16, #tpu.memory_space<vmem>>, vector<8x128xbf16>
    %c0_47 = arith.constant 0 : index
    %c0_48 = arith.constant 0 : index
    %88 = vector.load %arg16[%c0_47, %c0_48] : memref<128x128xbf16, #tpu.memory_space<vmem>>, vector<128x128xbf16>
    %cst_49 = arith.constant dense<0.000000e+00> : vector<8x128xf32>
    %89 = tpu.matmul %87, %88, %cst_49 {dimension_numbers = #tpu.dot_dimension_numbers<[1], [0], [0], [1], [0, 0, 1, 1], [], []>} : vector<8x128xbf16>, vector<128x128xbf16>, vector<8x128xf32> -> vector<8x128xf32>
    %c0_50 = arith.constant 0 : index
    %c0_51 = arith.constant 0 : index
    %90 = vector.load %arg17[%c0_50, %c0_51] : memref<1x128xf32, #tpu.memory_space<vmem>>, vector<1x128xf32>
    %91 = vector.broadcast %90 : vector<1x128xf32> to vector<8x128xf32>
    %92 = arith.addf %89, %91 : vector<8x128xf32>
    %cst_52 = arith.constant 0.000000e+00 : f32
    %93 = vector.broadcast %cst_52 : f32 to vector<8x128xf32>
    %94 = arith.maximumf %92, %93 : vector<8x128xf32>
    %cst_53 = arith.constant dense<0.000000e+00> : vector<128xf32>
    %95 = vector.multi_reduction <add>, %94, %cst_53 [0] : vector<8x128xf32> to vector<128xf32>
    %96 = vector.shape_cast %95 : vector<128xf32> to vector<1x128xf32>
    %cst_54 = arith.constant 8.000000e+00 : f32
    %97 = vector.broadcast %cst_54 : f32 to vector<1x128xf32>
    %98 = arith.divf %96, %97 : vector<1x128xf32>
    %99 = vector.broadcast %98 : vector<1x128xf32> to vector<8x128xf32>
    %100 = arith.subf %94, %99 : vector<8x128xf32>
    %101 = arith.mulf %100, %100 : vector<8x128xf32>
    %cst_55 = arith.constant dense<0.000000e+00> : vector<128xf32>
    %102 = vector.multi_reduction <add>, %101, %cst_55 [0] : vector<8x128xf32> to vector<128xf32>
    %103 = vector.shape_cast %102 : vector<128xf32> to vector<1x128xf32>
    %cst_56 = arith.constant 8.000000e+00 : f32
    %104 = vector.broadcast %cst_56 : f32 to vector<1x128xf32>
    %105 = arith.divf %103, %104 : vector<1x128xf32>
    %c0_57 = arith.constant 0 : index
    %c0_58 = arith.constant 0 : index
    %106 = vector.load %arg18[%c0_57, %c0_58] : memref<1x128xf32, #tpu.memory_space<vmem>>, vector<1x128xf32>
    %cst_59 = arith.constant 9.99999974E-6 : f32
    %107 = vector.broadcast %cst_59 : f32 to vector<1x128xf32>
    %108 = arith.addf %105, %107 : vector<1x128xf32>
    %109 = math.rsqrt %108 : vector<1x128xf32>
    %110 = arith.mulf %106, %109 : vector<1x128xf32>
    %111 = vector.broadcast %110 : vector<1x128xf32> to vector<8x128xf32>
    %112 = arith.mulf %100, %111 : vector<8x128xf32>
    %c0_60 = arith.constant 0 : index
    %c0_61 = arith.constant 0 : index
    %113 = vector.load %arg19[%c0_60, %c0_61] : memref<1x128xf32, #tpu.memory_space<vmem>>, vector<1x128xf32>
    %114 = vector.broadcast %113 : vector<1x128xf32> to vector<8x128xf32>
    %115 = arith.addf %112, %114 : vector<8x128xf32>
    %116 = arith.truncf %115 : vector<8x128xf32> to vector<8x128xbf16>
    %c0_62 = arith.constant 0 : index
    %c0_63 = arith.constant 0 : index
    %117 = vector.load %arg20[%c0_62, %c0_63] : memref<128x128xbf16, #tpu.memory_space<vmem>>, vector<128x128xbf16>
    %cst_64 = arith.constant dense<0.000000e+00> : vector<8x128xf32>
    %118 = tpu.matmul %116, %117, %cst_64 {dimension_numbers = #tpu.dot_dimension_numbers<[1], [0], [0], [1], [0, 0, 1, 1], [], []>} : vector<8x128xbf16>, vector<128x128xbf16>, vector<8x128xf32> -> vector<8x128xf32>
    %119 = arith.truncf %86 : vector<8x128xf32> to vector<8x128xbf16>
    %c0_65 = arith.constant 0 : index
    %c0_66 = arith.constant 0 : index
    %120 = vector.load %arg21[%c0_65, %c0_66] : memref<128x128xbf16, #tpu.memory_space<vmem>>, vector<128x128xbf16>
    %cst_67 = arith.constant dense<0.000000e+00> : vector<8x128xf32>
    %121 = tpu.matmul %119, %120, %cst_67 {dimension_numbers = #tpu.dot_dimension_numbers<[1], [0], [0], [1], [0, 0, 1, 1], [], []>} : vector<8x128xbf16>, vector<128x128xbf16>, vector<8x128xf32> -> vector<8x128xf32>
    %122 = arith.addf %118, %121 : vector<8x128xf32>
    %c0_68 = arith.constant 0 : index
    %c0_69 = arith.constant 0 : index
    %123 = vector.load %arg22[%c0_68, %c0_69] : memref<1x128xf32, #tpu.memory_space<vmem>>, vector<1x128xf32>
    %124 = vector.broadcast %123 : vector<1x128xf32> to vector<8x128xf32>
    %125 = arith.addf %122, %124 : vector<8x128xf32>
    %cst_70 = arith.constant 0.000000e+00 : f32
    %126 = vector.broadcast %cst_70 : f32 to vector<8x128xf32>
    %127 = arith.maximumf %125, %126 : vector<8x128xf32>
    %c0_71 = arith.constant 0 : index
    %c0_72 = arith.constant 0 : index
    %128 = vector.load %arg23[%c0_71, %c0_72] : memref<1x128xf32, #tpu.memory_space<vmem>>, vector<1x128xf32>
    %129 = vector.broadcast %128 : vector<1x128xf32> to vector<8x128xf32>
    %130 = arith.mulf %127, %129 : vector<8x128xf32>
    %cst_73 = arith.constant dense<0.000000e+00> : vector<8xf32>
    %131 = vector.multi_reduction <add>, %130, %cst_73 [1] : vector<8x128xf32> to vector<8xf32>
    %132 = vector.shape_cast %131 : vector<8xf32> to vector<8x1xf32>
    %c0_74 = arith.constant 0 : index
    %c0_75 = arith.constant 0 : index
    %133 = vector.load %arg24[%c0_74, %c0_75] : memref<1x1xf32, #tpu.memory_space<vmem>>, vector<1x1xf32>
    %134 = vector.broadcast %133 : vector<1x1xf32> to vector<8x1xf32>
    %135 = arith.addf %132, %134 : vector<8x1xf32>
    %c0_76 = arith.constant 0 : index
    %c0_77 = arith.constant 0 : index
    %136 = vector.load %arg25[%c0_76, %c0_77] : memref<8x1xf32, #tpu.memory_space<vmem>>, vector<8x1xf32>
    tpu.vector_store %arg25[%c0_76, %c0_77], %135 {strides = array<i32>} : memref<8x1xf32, #tpu.memory_space<vmem>>, vector<8x1xf32>,
    return
  }
  func.func @transform_0(%arg0: i32, %arg1: memref<1xi32, #tpu.memory_space<smem>>) -> (i32, i32) {
    %c0_i32 = arith.constant 0 : i32
    %c0_i32_0 = arith.constant 0 : i32
    %c0_i32_1 = arith.constant 0 : i32
    return %c0_i32, %c0_i32_0 : i32, i32
  }
  func.func @transform_1(%arg0: i32, %arg1: memref<1xi32, #tpu.memory_space<smem>>) -> (i32, i32) {
    %c0_i32 = arith.constant 0 : i32
    %c0_i32_0 = arith.constant 0 : i32
    %c0_i32_1 = arith.constant 0 : i32
    return %c0_i32, %c0_i32_0 : i32, i32
  }
  func.func @transform_2(%arg0: i32, %arg1: memref<1xi32, #tpu.memory_space<smem>>) -> (i32, i32) {
    %c0_i32 = arith.constant 0 : i32
    %c0_i32_0 = arith.constant 0 : i32
    %c0_i32_1 = arith.constant 0 : i32
    return %c0_i32, %c0_i32_0 : i32, i32
  }
  func.func @transform_3(%arg0: i32, %arg1: memref<1xi32, #tpu.memory_space<smem>>) -> (i32, i32) {
    %c0_i32 = arith.constant 0 : i32
    %c0_i32_0 = arith.constant 0 : i32
    %c0_i32_1 = arith.constant 0 : i32
    return %c0_i32, %c0_i32_0 : i32, i32
  }
  func.func @transform_4(%arg0: i32, %arg1: memref<1xi32, #tpu.memory_space<smem>>) -> (i32, i32) {
    %c0_i32 = arith.constant 0 : i32
    %c0_i32_0 = arith.constant 0 : i32
    %c0_i32_1 = arith.constant 0 : i32
    return %c0_i32, %c0_i32_0 : i32, i32
  }
  func.func @transform_5(%arg0: i32, %arg1: memref<1xi32, #tpu.memory_space<smem>>) -> (i32, i32) {
    %c0_i32 = arith.constant 0 : i32
    %c0_i32_0 = arith.constant 0 : i32
    %c0_i32_1 = arith.constant 0 : i32
    return %c0_i32, %c0_i32_0 : i32, i32
  }
  func.func @transform_6(%arg0: i32, %arg1: memref<1xi32, #tpu.memory_space<smem>>) -> (i32, i32) {
    %c0_i32 = arith.constant 0 : i32
    %c0_i32_0 = arith.constant 0 : i32
    %c0_i32_1 = arith.constant 0 : i32
    return %c0_i32, %c0_i32_0 : i32, i32
  }
  func.func @transform_7(%arg0: i32, %arg1: memref<1xi32, #tpu.memory_space<smem>>) -> (i32, i32) {
    %c0_i32 = arith.constant 0 : i32
    %c0_i32_0 = arith.constant 0 : i32
    %c0_i32_1 = arith.constant 0 : i32
    return %c0_i32, %c0_i32_0 : i32, i32
  }
  func.func @transform_8(%arg0: i32, %arg1: memref<1xi32, #tpu.memory_space<smem>>) -> (i32, i32) {
    %c0_i32 = arith.constant 0 : i32
    %c0_i32_0 = arith.constant 0 : i32
    %c0_i32_1 = arith.constant 0 : i32
    return %c0_i32, %c0_i32_0 : i32, i32
  }
  func.func @transform_9(%arg0: i32, %arg1: memref<1xi32, #tpu.memory_space<smem>>) -> (i32, i32) {
    %c0_i32 = arith.constant 0 : i32
    %c0_i32_0 = arith.constant 0 : i32
    %c0_i32_1 = arith.constant 0 : i32
    return %c0_i32, %c0_i32_0 : i32, i32
  }
  func.func @transform_10(%arg0: i32, %arg1: memref<1xi32, #tpu.memory_space<smem>>) -> (i32, i32) {
    %c0_i32 = arith.constant 0 : i32
    %c0_i32_0 = arith.constant 0 : i32
    %c0_i32_1 = arith.constant 0 : i32
    return %c0_i32, %c0_i32_0 : i32, i32
  }
  func.func @transform_11(%arg0: i32, %arg1: memref<1xi32, #tpu.memory_space<smem>>) -> (i32, i32) {
    %c0_i32 = arith.constant 0 : i32
    %c0_i32_0 = arith.constant 0 : i32
    %c0_i32_1 = arith.constant 0 : i32
    return %c0_i32, %c0_i32_0 : i32, i32
  }
  func.func @transform_12(%arg0: i32, %arg1: memref<1xi32, #tpu.memory_space<smem>>) -> (i32, i32) {
    %c0_i32 = arith.constant 0 : i32
    %c0_i32_0 = arith.constant 0 : i32
    %c0_i32_1 = arith.constant 0 : i32
    return %c0_i32, %c0_i32_0 : i32, i32
  }
  func.func @transform_13(%arg0: i32, %arg1: memref<1xi32, #tpu.memory_space<smem>>) -> (i32, i32) {
    %c0_i32 = arith.constant 0 : i32
    %c0_i32_0 = arith.constant 0 : i32
    %c0_i32_1 = arith.constant 0 : i32
    return %c0_i32, %c0_i32_0 : i32, i32
  }
  func.func @transform_14(%arg0: i32, %arg1: memref<1xi32, #tpu.memory_space<smem>>) -> (i32, i32) {
    %c0_i32 = arith.constant 0 : i32
    %c0_i32_0 = arith.constant 0 : i32
    %c0_i32_1 = arith.constant 0 : i32
    return %c0_i32, %c0_i32_0 : i32, i32
  }
  func.func @transform_15(%arg0: i32, %arg1: memref<1xi32, #tpu.memory_space<smem>>) -> (i32, i32) {
    %c0_i32 = arith.constant 0 : i32
    %c0_i32_0 = arith.constant 0 : i32
    %c0_i32_1 = arith.constant 0 : i32
    return %c0_i32, %c0_i32_0 : i32, i32
  }
  func.func @transform_16(%arg0: i32, %arg1: memref<1xi32, #tpu.memory_space<smem>>) -> (i32, i32) {
    %c0_i32 = arith.constant 0 : i32
    %c0_i32_0 = arith.constant 0 : i32
    %c0_i32_1 = arith.constant 0 : i32
    return %c0_i32, %c0_i32_0 : i32, i32
  }
  func.func @transform_17(%arg0: i32, %arg1: memref<1xi32, #tpu.memory_space<smem>>) -> (i32, i32) {
    %c0_i32 = arith.constant 0 : i32
    %c0_i32_0 = arith.constant 0 : i32
    %c0_i32_1 = arith.constant 0 : i32
    return %c0_i32, %c0_i32_0 : i32, i32
  }
  func.func @transform_18(%arg0: i32, %arg1: memref<1xi32, #tpu.memory_space<smem>>) -> (i32, i32) {
    %c0_i32 = arith.constant 0 : i32
    %c0_i32_0 = arith.constant 0 : i32
    %c0_i32_1 = arith.constant 0 : i32
    return %c0_i32, %c0_i32_0 : i32, i32
  }
  func.func @transform_19(%arg0: i32, %arg1: memref<1xi32, #tpu.memory_space<smem>>) -> (i32, i32) {
    %c0_i32 = arith.constant 0 : i32
    %c0_i32_0 = arith.constant 0 : i32
    %c0_i32_1 = arith.constant 0 : i32
    return %c0_i32, %c0_i32_0 : i32, i32
  }
  func.func @transform_20(%arg0: i32, %arg1: memref<1xi32, #tpu.memory_space<smem>>) -> (i32, i32) {
    %c0_i32 = arith.constant 0 : i32
    %c0_i32_0 = arith.constant 0 : i32
    %c0_i32_1 = arith.constant 0 : i32
    return %c0_i32, %c0_i32_0 : i32, i32
  }
  func.func @transform_21(%arg0: i32, %arg1: memref<1xi32, #tpu.memory_space<smem>>) -> (i32, i32) {
    %c0_i32 = arith.constant 0 : i32
    %c0_i32_0 = arith.constant 0 : i32
    %c0_i32_1 = arith.constant 0 : i32
    return %c0_i32, %c0_i32_0 : i32, i32
  }
  func.func @transform_22(%arg0: i32, %arg1: memref<1xi32, #tpu.memory_space<smem>>) -> (i32, i32) {
    %c0_i32 = arith.constant 0 : i32
    %c0_i32_0 = arith.constant 0 : i32
    %c0_i32_1 = arith.constant 0 : i32
    return %c0_i32, %c0_i32_0 : i32, i32
  }
  func.func @transform_23(%arg0: i32, %arg1: memref<1xi32, #tpu.memory_space<smem>>) -> (i32, i32) {
    %c0_i32 = arith.constant 0 : i32
    %c0_i32_0 = arith.constant 0 : i32
    %c0_i32_1 = arith.constant 0 : i32
    return %c0_i32, %c0_i32_0 : i32, i32
  }
}

</mosaic_0001>

<bundles_post_ra>
// kernel: tpu_custom_call.1
= control target key start
LH: loop header
LB: loop body
LE: loop exit
PB: predicated region body
PF: predicated region fallthrough
CT: control target
= control target key end

     0   :  { %s1752_s0 = inlined_call_operand.<no memory space> [shape: s32[1], index: 0, kind: input, shape index: {}]   ;;  %s1753_s1 = inlined_call_operand.vmem [shape: bf16[8,128], index: 1, kind: input, shape index: {}]   ;;  %s1754_s2 = inlined_call_operand.hbm [shape: bf16[8,128], index: 2, kind: input, shape index: {}]   ;;  %s1755_s3 = inlined_call_operand.hbm [shape: bf16[128,128], index: 3, kind: input, shape index: {}]   ;;  %s1756_s4 = inlined_call_operand.vmem [shape: f32[1,128], index: 4, kind: input, shape index: {}]   ;;  %s1757_s5 = inlined_call_operand.vmem [shape: f32[1,128], index: 5, kind: input, shape index: {}]   ;;  %s1758_s6 = inlined_call_operand.vmem [shape: f32[1,128], index: 6, kind: input, shape index: {}]   ;;  %s1759_s7 = inlined_call_operand.hbm [shape: bf16[128,128], index: 7, kind: input, shape index: {}]   ;;  %s1760_s8 = inlined_call_operand.vmem [shape: f32[1,128], index: 8, kind: input, shape index: {}]   ;;  %s1761_s9 = inlined_call_operand.vmem [shape: f32[1,128], index: 9, kind: input, shape index: {}]   ;;  %s1762_s10 = inlined_call_operand.vmem [shape: f32[1,128], index: 10, kind: input, shape index: {}]   ;;  %s1763_s11 = inlined_call_operand.hbm [shape: bf16[128,128], index: 11, kind: input, shape index: {}]   ;;  %s1764_s12 = inlined_call_operand.vmem [shape: f32[1,128], index: 12, kind: input, shape index: {}]   ;;  %s1765_s13 = inlined_call_operand.vmem [shape: f32[1,128], index: 13, kind: input, shape index: {}]   ;;  %s1766_s14 = inlined_call_operand.vmem [shape: f32[1,128], index: 14, kind: input, shape index: {}]   ;;  %s1767_s15 = inlined_call_operand.hbm [shape: bf16[128,128], index: 15, kind: input, shape index: {}]   ;;  %s1768_s16 = inlined_call_operand.vmem [shape: f32[1,128], index: 16, kind: input, shape index: {}]   ;;  %s1769_s17 = inlined_call_operand.vmem [shape: f32[1,128], index: 17, kind: input, shape index: {}]   ;;  %s1770_s18 = inlined_call_operand.vmem [shape: f32[1,128], index: 18, kind: input, shape index: {}]   ;;  %s1771_s19 = inlined_call_operand.hbm [shape: bf16[128,128], index: 19, kind: input, shape index: {}]   ;;  %s1772_s20 = inlined_call_operand.hbm [shape: bf16[128,128], index: 20, kind: input, shape index: {}]   ;;  %s1773_s21 = inlined_call_operand.vmem [shape: f32[1,128], index: 21, kind: input, shape index: {}]   ;;  %s1774_s22 = inlined_call_operand.vmem [shape: f32[1,128], index: 22, kind: input, shape index: {}]   ;;  %s1775_s23 = inlined_call_operand.<no memory space> [shape: f32[1,1], index: 23, kind: input, shape index: {}]   ;;  %s1776_s24 = inlined_call_operand.vmem [shape: f32[8,1], index: 24, kind: output, shape index: {}]  }
   0x1   :  { %1777 = sst [smem:[#allocation20_spill]] %s1753_s1  ;;  %v30_v0 = vstv %s1775_s23 }
   0x2   :  { %1778 = sst [smem:[#allocation21_spill]] %s1754_s2  ;;  %31 = vst [vmem:[#allocation4] sm:$0x1] %v30_v0 }
   0x3   :  { %1779 = sst [smem:[#allocation22_spill]] %s1755_s3 }
   0x4   :  { %1780 = sst [smem:[#allocation23_spill]] %s1756_s4 }
   0x5   :  { %1781 = sst [smem:[#allocation24_spill]] %s1757_s5 }
   0x6   :  { %1782 = sst [smem:[#allocation25_spill]] %s1758_s6 }
   0x7   :  { %1783 = sst [smem:[#allocation26_spill]] %s1759_s7 }
   0x8   :  { %1784 = sst [smem:[#allocation27_spill]] %s1760_s8 }
   0x9   :  { %32 = vsyncpa [#allocation6], 0 }
   0xa   :  { %33 = vsyncpa [#allocation8], 0 }
   0xb   :  { %34 = vsyncpa [#allocation11], 0 }
   0xc   :  { %35 = vsyncpa [#allocation14], 0  ;;  %s1460_s27 = smov [#allocation7]  }
   0xd   :  { %s53_s28 = sshll.u32 %s1460_s27, 4  ;;  %s54_s28 = int_to_ptr.vmem [resolvable:$true] %s53_s28 }
   0xe   :  { %s1320_s6 = scalar_lea.vmem %s54_s28, 1024  ;;  %p1325_p1 = scmp.lt.s32.totalorder %s54_s28, %s54_s28 }
   0xf   :  { %p1321_p0 = scmp.ne.s32.totalorder %s54_s28, %s1320_s6  ;;  %p1326_p2 = scmp.lt.s32.totalorder %s1320_s6, %s1320_s6 }
  0x11   :  { %p1327_p3 = por %p1326_p2, %p1325_p1 }
  0x13   :  { %p1328_p4 = pnand %p1327_p3, %p1321_p0 }
  0x15   :  { %1331 = shalt.err (!%p1328_p4)
}
  0x16   :  { %s1461_s2 = smov 64   ;;  %s1462_s29 = smov 4  }
  0x17   :  { %s1785_s7 = sld [smem:[#allocation22_spill]]  ;;  %s1463_s30 = smov [#allocation10]  }
  0x18   :  { %s89_s3 = sshll.u32 %s1463_s30, 4  ;;  %s1464_s25 = smov [#allocation13]   ;;  %s90_s3 = int_to_ptr.vmem [resolvable:$true] %s89_s3 }
  0x19   :  { %s125_s8 = sshll.u32 %s1464_s25, 4  ;;  %s1340_s4 = scalar_lea.vmem %s90_s3, 1024  ;;  %s126_s8 = int_to_ptr.vmem [resolvable:$true] %s125_s8 }
  0x1a   :  { %p1341_p5 = scmp.ne.s32.totalorder %s90_s3, %s1340_s4  ;;  %p1345_p6 = scmp.lt.s32.totalorder %s90_s3, %s90_s3 }
  0x1b   :  { %p1346_p7 = scmp.lt.s32.totalorder %s1340_s4, %s1340_s4 }
  0x1d   :  { %59 = dma.hbm_to_vmem [thread:$0]  %s1785_s7, 1024, %s54_s28, [#allocation8], %s1461_s2, %s1461_s2, %s1462_s29  }
  0x1e   :  { %p1347_p8 = por %p1346_p7, %p1345_p6 }
  0x20   :  { %p1348_p9 = pnand %p1347_p8, %p1341_p5 }
  0x22   :  { %1351 = shalt.err (!%p1348_p9)
}
  0x23   :  { %95 = dma.hbm_to_vmem [thread:$0]  %s1763_s11, 1024, %s90_s3, [#allocation11], %s1461_s2, %s1461_s2, %s1462_s29  }
  0x24   :  { %s1360_s26 = scalar_lea.vmem %s126_s8, 1024  ;;  %p1365_p11 = scmp.lt.s32.totalorder %s126_s8, %s126_s8 }
  0x25   :  { %p1361_p10 = scmp.ne.s32.totalorder %s126_s8, %s1360_s26  ;;  %p1366_p12 = scmp.lt.s32.totalorder %s1360_s26, %s1360_s26 }
  0x27   :  { %p1367_p13 = por %p1366_p12, %p1365_p11 }
  0x29   :  { %p1368_p0 = pnand %p1367_p13, %p1361_p10 }
  0x2b   :  { %1371 = shalt.err (!%p1368_p0)
}
  0x2c   :  { %131 = dma.hbm_to_vmem [thread:$0]  %s1771_s19, 1024, %s126_s8, [#allocation14], %s1461_s2, %s1461_s2, %s1462_s29  }
  0x2d   :  { %s1465_s6 = smov [#allocation5]   ;;  %s1466_s0 = smov [#allocation9]  }
  0x2e   :  { %s44_s23 = sshll.u32 %s1465_s6, 4  ;;  %s71_s11 = sshll.u32 %s1466_s0, 4  ;;  %s45_s23 = int_to_ptr.vmem [resolvable:$true] %s44_s23  ;;  %s72_s11 = int_to_ptr.vmem [resolvable:$true] %s71_s11 }
  0x2f   :  { %s1380_s7 = scalar_lea.vmem %s45_s23, 64  ;;  %p1385_p2 = scmp.lt.s32.totalorder %s45_s23, %s45_s23 }
  0x30   :  { %p1381_p1 = scmp.ne.s32.totalorder %s45_s23, %s1380_s7  ;;  %p1386_p3 = scmp.lt.s32.totalorder %s1380_s7, %s1380_s7 }
  0x32   :  { %p1387_p4 = por %p1386_p3, %p1385_p2 }
  0x34   :  { %p1388_p5 = pnand %p1387_p4, %p1381_p1 }
  0x36   :  { %1391 = shalt.err (!%p1388_p5)
}
  0x37   :  { %s1786_s25 = sld [smem:[#allocation21_spill]]  ;;  %s1400_s4 = scalar_lea.vmem %s72_s11, 1024 }
  0x38   :  { %p1401_p6 = scmp.ne.s32.totalorder %s72_s11, %s1400_s4  ;;  %p1405_p7 = scmp.lt.s32.totalorder %s72_s11, %s72_s11 }
  0x39   :  { %p1406_p8 = scmp.lt.s32.totalorder %s1400_s4, %s1400_s4 }
  0x3b   :  { %p1407_p9 = por %p1406_p8, %p1405_p7 }
  0x3d   :  { %47 = dma.hbm_to_vmem [thread:$0]  %s1786_s25, 64, %s45_s23, [#allocation6]  }
  0x3e   :  { %p1408_p10 = pnand %p1407_p9, %p1401_p6 }
  0x40   :  { %1411 = shalt.err (!%p1408_p10)
}
  0x41   :  { %s1787_s1 = sld [smem:[#allocation26_spill]]  ;;  %s1467_s5 = smov [#allocation12]  }
  0x42   :  { %s107_s26 = sshll.u32 %s1467_s5, 4  ;;  %s1468_s27 = smov [#allocation15]   ;;  %s108_s26 = int_to_ptr.vmem [resolvable:$true] %s107_s26 }
  0x43   :  { %s137_s28 = sshll.u32 %s1468_s27, 4  ;;  %s1420_s6 = scalar_lea.vmem %s108_s26, 1024  ;;  %s138_s28 = int_to_ptr.vmem [resolvable:$true] %s137_s28 }
  0x44   :  { %p1421_p11 = scmp.ne.s32.totalorder %s108_s26, %s1420_s6  ;;  %p1425_p12 = scmp.lt.s32.totalorder %s108_s26, %s108_s26 }
  0x45   :  { %p1426_p13 = scmp.lt.s32.totalorder %s1420_s6, %s1420_s6 }
  0x47   :  { %77 = dma.hbm_to_vmem [thread:$0]  %s1787_s1, 1024, %s72_s11, [#allocation8], %s1461_s2, %s1461_s2, %s1462_s29  }
  0x48   :  { %p1427_p0 = por %p1426_p13, %p1425_p12 }
  0x4a   :  { %p1428_p1 = pnand %p1427_p0, %p1421_p11 }
  0x4c   :  { %1431 = shalt.err (!%p1428_p1)
}
  0x4d   :  { %113 = dma.hbm_to_vmem [thread:$0]  %s1767_s15, 1024, %s108_s26, [#allocation11], %s1461_s2, %s1461_s2, %s1462_s29  }
  0x4e   :  { %s1440_s11 = scalar_lea.vmem %s138_s28, 1024  ;;  %p1445_p3 = scmp.lt.s32.totalorder %s138_s28, %s138_s28 }
  0x4f   :  { %p1441_p2 = scmp.ne.s32.totalorder %s138_s28, %s1440_s11  ;;  %p1446_p4 = scmp.lt.s32.totalorder %s1440_s11, %s1440_s11 }
  0x51   :  { %p1447_p5 = por %p1446_p4, %p1445_p3 }
  0x53   :  { %p1448_p6 = pnand %p1447_p5, %p1441_p2 }
  0x55   :  { %1451 = shalt.err (!%p1448_p6)
}
  0x56   :  { %143 = dma.hbm_to_vmem [thread:$0]  %s1772_s20, 1024, %s138_s28, [#allocation14], %s1461_s2, %s1461_s2, %s1462_s29  }
  0x57   :  { %1452 = dma.done.wait [#allocation6], 64  }
  0x58   :  { %1453 = vsyncadd [#allocation6], 4294967232 }
  0x59   :  { %1454 = dma.done.wait [#allocation8], 2048  }
  0x5a   :  { %1455 = vsyncadd [#allocation8], 4294965248 }
  0x5b   :  { %1456 = dma.done.wait [#allocation11], 2048  }
  0x5c   :  { %1457 = vsyncadd [#allocation11], 4294965248 }
  0x5d   :  { %1458 = dma.done.wait [#allocation14], 2048  }
  0x5e   :  { %1459 = vsyncadd [#allocation14], 4294965248  ;;  %v1469_v1 = vmov 0.0   ;;  %vm1470_vm0 = vmmov 0   ;;  %v1256_v2 = vld [vmem:[#allocation7 + $0x38] sm:$0xff]   ;;  %v1257_v3 = vld [vmem:[#allocation7 + $0x30] sm:$0xff]   ;;  %v307_v43 = vlaneseq }
  0x5f   :  { %1125 = vmatprep.subr.bf16.mxu0 %v1469_v1  ;;  %1141 = vmatprep.mubr.msk.bf16.mxu0 %vm1470_vm0, %v1469_v1  ;;  %v1258_v4 = vld [vmem:[#allocation7 + $0x28] sm:$0xff]   ;;  %v1259_v5 = vld [vmem:[#allocation7 + $0x20] sm:$0xff]   ;;  %v1260_v6 = vld [vmem:[#allocation7 + $0x18] sm:$0xff]   ;;  %s1788_s2 = sld [smem:[#allocation20_spill]]  ;;  %vm1002_vm1 = vcmask 7168  }
  0x60   :  { %1145 = vmatprep.subr.bf16.mxu1 %v1469_v1  ;;  %1161 = vmatprep.mubr.msk.bf16.mxu1 %vm1470_vm0, %v1469_v1  ;;  %v1261_v7 = vld [vmem:[#allocation7 + $0x10] sm:$0xff]   ;;  %v1262_v8 = vld [vmem:[#allocation7 + $0x8] sm:$0xff]   ;;  %v1263_v9 = vld [vmem:[#allocation7] sm:$0xff]   ;;  %s1789_s25 = sld [smem:[#allocation23_spill]]  ;;  %v308_v44 = vshrl.u32 %v307_v43, 7 }
  0x61   :  { %1126 = vmatpush3.bf16.msra.mxu0 %v1256_v2  ;;  %v1264_v11 = vld [vmem:[#allocation9 + $0x38] sm:$0xff]   ;;  %v1265_v12 = vld [vmem:[#allocation9 + $0x30] sm:$0xff]   ;;  %v1266_v13 = vld [vmem:[#allocation9 + $0x28] sm:$0xff]   ;;  %s1790_s8 = sld [smem:[#allocation24_spill]] }
  0x62   :  { %1127 = vmatprep.subr.bf16.mxu0 %v1469_v1  ;;  %1146 = vmatpush3.bf16.msra.mxu1 %v1264_v11  ;;  %v1267_v14 = vld [vmem:[#allocation9 + $0x20] sm:$0xff]   ;;  %v1268_v15 = vld [vmem:[#allocation9 + $0x18] sm:$0xff]   ;;  %v1269_v16 = vld [vmem:[#allocation9 + $0x10] sm:$0xff]   ;;  %v1671_v46 = vsub.s32 0, %v308_v44  ;;  %s1791_s26 = sld [smem:[#allocation25_spill]] }
  0x63   :  { %1147 = vmatprep.subr.bf16.mxu1 %v1469_v1  ;;  %v1270_v17 = vld [vmem:[#allocation9 + $0x8] sm:$0xff]   ;;  %v1271_v18 = vld [vmem:[#allocation9] sm:$0xff]   ;;  %v1272_v53 = vld [vmem:[#allocation12 + $0x38] sm:$0xff]   ;;  %s1792_s6 = sld [smem:[#allocation27_spill]] }
  0x64   :  { %v1273_v55 = vld [vmem:[#allocation12 + $0x30] sm:$0xff]   ;;  %v1274_v56 = vld [vmem:[#allocation12 + $0x28] sm:$0xff]   ;;  %v1275_v57 = vld [vmem:[#allocation12 + $0x20] sm:$0xff]  }
  0x65   :  { %1128 = vmatpush3.bf16.msra.mxu0 %v1257_v3  ;;  %v172_v10 = vld [vmem:[%s1788_s2] sm:$0xf]  ;;  %v1277_v59 = vld [vmem:[#allocation12 + $0x10] sm:$0xff]   ;;  %v1278_v60 = vld [vmem:[#allocation12 + $0x8] sm:$0xff]  }
  0x66   :  { %1129 = vmatprep.subr.bf16.mxu0 %v1469_v1  ;;  %1148 = vmatpush3.bf16.msra.mxu1 %v1265_v12  ;;  %v1012_v19 = vld [vmem:[%s1789_s25] ss:$0 sm:$0xff]  ;;  %v1279_v61 = vld [vmem:[#allocation12] sm:$0xff]   ;;  %v617_v62 = vld [vmem:[#allocation5] sm:$0xf] }
  0x67   :  { %1149 = vmatprep.subr.bf16.mxu1 %v1469_v1  ;;  %v302_v45 = vld [vmem:[%s1790_s8] sm:$0x1]  ;;  %v1281_v0 = vld [vmem:[#allocation10 + $0x30] sm:$0xff]   ;;  %v1282_v2 = vld [vmem:[#allocation10 + $0x28] sm:$0xff]  }
  0x68   :  { %v1021_v50 = vld [vmem:[%s1791_s26] ss:$0 sm:$0xff]  ;;  %v1283_v3 = vld [vmem:[#allocation10 + $0x20] sm:$0xff]  }
  0x69   :  { %1130 = vmatpush3.bf16.msra.mxu0 %v1258_v4  ;;  %v1276_v58 = vld [vmem:[#allocation12 + $0x18] sm:$0xff]  }
  0x6a   :  { %1131 = vmatprep.subr.bf16.mxu0 %v1469_v1  ;;  %1150 = vmatpush3.bf16.msra.mxu1 %v1266_v13  ;;  %v1280_v63 = vld [vmem:[#allocation10 + $0x38] sm:$0xff]   ;;  %v1289_v13 = vld [vmem:[#allocation13 + $0x30] sm:$0xff]  }
  0x6b   :  { %1151 = vmatprep.subr.bf16.mxu1 %v1469_v1  ;;  %v1284_v4 = vld [vmem:[#allocation10 + $0x18] sm:$0xff]  }
  0x6d   :  { %1132 = vmatpush3.bf16.msra.mxu0 %v1259_v5  ;;  %v1285_v5 = vld [vmem:[#allocation10 + $0x10] sm:$0xff]  }
  0x6e   :  { %1133 = vmatprep.subr.bf16.mxu0 %v1469_v1  ;;  %1152 = vmatpush3.bf16.msra.mxu1 %v1267_v14 }
  0x6f   :  { %1153 = vmatprep.subr.bf16.mxu1 %v1469_v1 }
  0x71   :  { %1134 = vmatpush3.bf16.msra.mxu0 %v1260_v6  ;;  %v1286_v6 = vld [vmem:[#allocation10 + $0x8] sm:$0xff]  }
  0x72   :  { %1135 = vmatprep.subr.bf16.mxu0 %v1469_v1  ;;  %1154 = vmatpush3.bf16.msra.mxu1 %v1268_v15 }
  0x73   :  { %1155 = vmatprep.subr.bf16.mxu1 %v1469_v1 }
  0x75   :  { %1136 = vmatpush3.bf16.msra.mxu0 %v1261_v7  ;;  %v1287_v7 = vld [vmem:[#allocation10] sm:$0xff]  }
  0x76   :  { %1137 = vmatprep.subr.bf16.mxu0 %v1469_v1  ;;  %1156 = vmatpush3.bf16.msra.mxu1 %v1269_v16 }
  0x77   :  { %1157 = vmatprep.subr.bf16.mxu1 %v1469_v1 }
  0x79   :  { %1138 = vmatpush3.bf16.msra.mxu0 %v1262_v8  ;;  %v1022_v8 = vld [vmem:[%s1792_s6] ss:$0 sm:$0xff] }
  0x7a   :  { %1139 = vmatprep.subr.bf16.mxu0 %v1469_v1  ;;  %1158 = vmatpush3.bf16.msra.mxu1 %v1270_v17 }
  0x7b   :  { %1159 = vmatprep.subr.bf16.mxu1 %v1469_v1 }
  0x7d   :  { %1140 = vmatpush3.bf16.msra.mxu0 %v1263_v9 }
  0x7e   :  { %1165 = vmatprep.subr.bf16.mxu0 %v1469_v1  ;;  %1160 = vmatpush3.bf16.msra.mxu1 %v1271_v18  ;;  %v1290_v18 = vld [vmem:[#allocation13 + $0x28] sm:$0xff]  }
  0x7f   :  { %1185 = vmatprep.subr.bf16.mxu1 %v1469_v1 }
  0x80   :  { %1142 = vmatmul.mubr.bf16.vlgmr.msra.gmra.mxu0 %v172_v10  ;;  %v1288_v10 = vld [vmem:[#allocation13 + $0x38] sm:$0xff]  }
  0x81   :  { %1181 = vmatprep.mubr.msk.bf16.mxu0 %vm1470_vm0, %v1469_v1  ;;  %1166 = vmatpush3.bf16.msra.mxu0 %v1280_v63 }
  0x82   :  { %1167 = vmatprep.subr.bf16.mxu0 %v1469_v1 }
  0x85   :  { %1168 = vmatpush3.bf16.msra.mxu0 %v1281_v0 }
  0x86   :  { %1169 = vmatprep.subr.bf16.mxu0 %v1469_v1 }
  0x89   :  { %1170 = vmatpush3.bf16.msra.mxu0 %v1282_v2 }
  0x8a   :  { %1171 = vmatprep.subr.bf16.mxu0 %v1469_v1 }
  0x8d   :  { %1172 = vmatpush3.bf16.msra.mxu0 %v1283_v3 }
  0x8e   :  { %1173 = vmatprep.subr.bf16.mxu0 %v1469_v1 }
  0x91   :  { %1174 = vmatpush3.bf16.msra.mxu0 %v1284_v4 }
  0x92   :  { %1175 = vmatprep.subr.bf16.mxu0 %v1469_v1 }
  0x95   :  { %1176 = vmatpush3.bf16.msra.mxu0 %v1285_v5 }
  0x96   :  { %1177 = vmatprep.subr.bf16.mxu0 %v1469_v1 }
  0x99   :  { %1178 = vmatpush3.bf16.msra.mxu0 %v1286_v6 }
  0x9a   :  { %1179 = vmatprep.subr.bf16.mxu0 %v1469_v1 }
  0x9d   :  { %1180 = vmatpush3.bf16.msra.mxu0 %v1287_v7 }
  0x9e   :  { %1205 = vmatprep.subr.bf16.mxu0 %v1469_v1 }
 0x140   :  { %v278_v20 = vpop.f32.mrf.mxu0 }
 0x141   :  { %v279_v21 = vadd.f32 %v1012_v19, %v278_v20 }
 0x142   :  { %v1143_v22 = vpop.f32.mrf.mxu0 }
 0x143   :  { %v284_v23 = vmax.f32 %v279_v21, 0.0  ;;  %v1291_v21 = vld [vmem:[#allocation13 + $0x20] sm:$0xff]  }
 0x144   :  { %v281_v24 = vpop.f32.mrf.mxu0 }
 0x145   :  { %v285_v25 = vrot.slane %v284_v23, 4  ;;  %v1292_v24 = vld [vmem:[#allocation13 + $0x18] sm:$0xff]  }
 0x146   :  { %v1144_v26 = vpop.f32.mrf.mxu0 }
 0x147   :  { %v286_v27 = vadd.f32 %v285_v25, %v284_v23 }
 0x149   :  { %v287_v28 = vrot.slane %v286_v27, 2 }
 0x14b   :  { %v288_v29 = vadd.f32 %v287_v28, %v286_v27  ;;  %v1293_v27 = vld [vmem:[#allocation13 + $0x10] sm:$0xff]  }
 0x14d   :  { %v289_v30 = vrot.slane %v288_v29, 1 }
 0x14f   :  { %v290_v31 = vadd.f32 %v289_v30, %v288_v29 }
 0x151   :  { %v292_v32 = vmul.f32 0.125, %v290_v31 }
 0x153   :  { %v293_v33 = vsub.f32 %v284_v23, %v292_v32 }
 0x155   :  { %v294_v34 = vmul.f32 %v293_v33, %v293_v33 }
 0x157   :  { %v295_v35 = vrot.slane %v294_v34, 4 }
 0x159   :  { %v296_v36 = vadd.f32 %v295_v35, %v294_v34 }
 0x15b   :  { %v297_v37 = vrot.slane %v296_v36, 2 }
 0x15d   :  { %v298_v38 = vadd.f32 %v297_v37, %v296_v36 }
 0x15f   :  { %v299_v39 = vrot.slane %v298_v38, 1 }
 0x161   :  { %v300_v40 = vadd.f32 %v299_v39, %v298_v38  ;;  %v450_v38 = vld [vmem:[%s1761_s9] sm:$0x1] }
 0x163   :  { %v301_v41 = vmul.f32 0.125, %v300_v40 }
 0x165   :  { %v303_v42 = vadd.f32 1e-05, %v301_v41 }
 0x167   :  { %1304 = vrsqrt.f32 %v303_v42  ;;  %v1031_v42 = vld [vmem:[%s1762_s10] ss:$0 sm:$0xff] }
 0x174   :  { %v1305_v47 = vpop.eup %1304 }
 0x175   :  { %v305_v48 = vmul.f32 %v1305_v47, %v302_v45  ;;  %v1042_v47 = vld [vmem:[%s1768_s16] ss:$0 sm:$0xff] }
 0x177   :  { %v310_v49 = vrot.slane %v305_v48, %v1671_v46 }
 0x179   :  { %v312_v51 = vmul.f32 %v310_v49, %v293_v33 }
 0x17b   :  { %v320_v52 = vadd.f32 %v1021_v50, %v312_v51 }
 0x17d   :  { %v321_v54 = vpack.c.bf16 %v320_v52, %v320_v52 }
 0x17f   :  { %1162 = vmatmul.mubr.bf16.vlgmr.msra.gmra.mxu1 %v321_v54 }
 0x180   :  { %1186 = vmatpush3.bf16.msra.mxu1 %v1272_v53  ;;  %1201 = vmatprep.mubr.msk.bf16.mxu1 %vm1470_vm0, %v1469_v1 }
 0x181   :  { %1187 = vmatprep.subr.bf16.mxu1 %v1469_v1 }
 0x184   :  { %1188 = vmatpush3.bf16.msra.mxu1 %v1273_v55 }
 0x185   :  { %1189 = vmatprep.subr.bf16.mxu1 %v1469_v1 }
 0x188   :  { %1190 = vmatpush3.bf16.msra.mxu1 %v1274_v56 }
 0x189   :  { %1191 = vmatprep.subr.bf16.mxu1 %v1469_v1 }
 0x18c   :  { %1192 = vmatpush3.bf16.msra.mxu1 %v1275_v57 }
 0x18d   :  { %1193 = vmatprep.subr.bf16.mxu1 %v1469_v1 }
 0x190   :  { %1194 = vmatpush3.bf16.msra.mxu1 %v1276_v58 }
 0x191   :  { %1195 = vmatprep.subr.bf16.mxu1 %v1469_v1 }
 0x194   :  { %1196 = vmatpush3.bf16.msra.mxu1 %v1277_v59 }
 0x195   :  { %1197 = vmatprep.subr.bf16.mxu1 %v1469_v1 }
 0x198   :  { %1198 = vmatpush3.bf16.msra.mxu1 %v1278_v60 }
 0x199   :  { %1199 = vmatprep.subr.bf16.mxu1 %v1469_v1 }
 0x19c   :  { %1200 = vmatpush3.bf16.msra.mxu1 %v1279_v61 }
 0x19d   :  { %1225 = vmatprep.subr.bf16.mxu1 %v1469_v1 }
 0x19f   :  { %1202 = vmatmul.mubr.bf16.vlgmr.msra.gmra.mxu1 %v617_v62 }
 0x1a0   :  { %1241 = vmatprep.mubr.msk.bf16.mxu1 %vm1470_vm0, %v1469_v1  ;;  %1226 = vmatpush3.bf16.msra.mxu1 %v1288_v10 }
 0x1a1   :  { %1227 = vmatprep.subr.bf16.mxu1 %v1469_v1 }
 0x1a4   :  { %1228 = vmatpush3.bf16.msra.mxu1 %v1289_v13 }
 0x1a5   :  { %1229 = vmatprep.subr.bf16.mxu1 %v1469_v1 }
 0x1a8   :  { %1230 = vmatpush3.bf16.msra.mxu1 %v1290_v18  ;;  %v1296_v18 = vld [vmem:[#allocation15 + $0x38] sm:$0xff]  }
 0x1a9   :  { %1231 = vmatprep.subr.bf16.mxu1 %v1469_v1 }
 0x1ac   :  { %1232 = vmatpush3.bf16.msra.mxu1 %v1291_v21  ;;  %v1299_v21 = vld [vmem:[#allocation15 + $0x20] sm:$0xff]  }
 0x1ad   :  { %1233 = vmatprep.subr.bf16.mxu1 %v1469_v1 }
 0x1b0   :  { %1234 = vmatpush3.bf16.msra.mxu1 %v1292_v24  ;;  %v1302_v24 = vld [vmem:[#allocation15 + $0x8] sm:$0xff]  }
 0x1b1   :  { %1235 = vmatprep.subr.bf16.mxu1 %v1469_v1 }
 0x1b4   :  { %1236 = vmatpush3.bf16.msra.mxu1 %v1293_v27 }
 0x1b5   :  { %1237 = vmatprep.subr.bf16.mxu1 %v1469_v1 }
 0x23f   :  { %v427_v9 = vpop.f32.mrf.mxu1 }
 0x240   :  { %v428_v11 = vadd.f32 %v1022_v8, %v427_v9  ;;  %v746_v8 = vld [vmem:[%s1769_s17] sm:$0x1] }
 0x241   :  { %v1163_v12 = vpop.f32.mrf.mxu1 }
 0x242   :  { %v433_v14 = vmax.f32 %v428_v11, 0.0  ;;  %v1294_v11 = vld [vmem:[#allocation13 + $0x8] sm:$0xff]  }
 0x243   :  { %v430_v15 = vpop.f32.mrf.mxu1  ;;  %1238 = vmatpush3.bf16.msra.mxu1 %v1294_v11 }
 0x244   :  { %v434_v16 = vrot.slane %v433_v14, 4  ;;  %1239 = vmatprep.subr.bf16.mxu1 %v1469_v1  ;;  %v1051_v15 = vld [vmem:[%s1770_s18] ss:$0 sm:$0xff] }
 0x245   :  { %v1164_v17 = vpop.f32.mrf.mxu1 }
 0x246   :  { %v435_v19 = vadd.f32 %v434_v16, %v433_v14 }
 0x248   :  { %v436_v20 = vrot.slane %v435_v19, 2 }
 0x24a   :  { %v437_v22 = vadd.f32 %v436_v20, %v435_v19  ;;  %v1297_v19 = vld [vmem:[#allocation15 + $0x30] sm:$0xff]   ;;  %v1298_v20 = vld [vmem:[#allocation15 + $0x28] sm:$0xff]  }
 0x24c   :  { %v438_v23 = vrot.slane %v437_v22, 1 }
 0x24e   :  { %v439_v25 = vadd.f32 %v438_v23, %v437_v22  ;;  %v1300_v22 = vld [vmem:[#allocation15 + $0x18] sm:$0xff]   ;;  %v1301_v23 = vld [vmem:[#allocation15 + $0x10] sm:$0xff]  }
 0x250   :  { %v440_v26 = vmul.f32 0.125, %v439_v25  ;;  %v1303_v25 = vld [vmem:[#allocation15] sm:$0xff]  }
 0x252   :  { %v441_v28 = vsub.f32 %v433_v14, %v440_v26  ;;  %v1295_v14 = vld [vmem:[#allocation13] sm:$0xff]   ;;  %v1032_v26 = vld [vmem:[%s1764_s12] ss:$0 sm:$0xff] }
 0x253   :  { %1240 = vmatpush3.bf16.msra.mxu1 %v1295_v14 }
 0x254   :  { %v442_v29 = vmul.f32 %v441_v28, %v441_v28 }
 0x256   :  { %v443_v30 = vrot.slane %v442_v29, 4 }
 0x258   :  { %v444_v31 = vadd.f32 %v443_v30, %v442_v29 }
 0x25a   :  { %v445_v32 = vrot.slane %v444_v31, 2 }
 0x25c   :  { %v446_v33 = vadd.f32 %v445_v32, %v444_v31 }
 0x25e   :  { %v447_v34 = vrot.slane %v446_v33, 1 }
 0x25f   :  { %v723_v48 = vpop.f32.mrf.mxu1 }
 0x260   :  { %v448_v35 = vadd.f32 %v447_v34, %v446_v33  ;;  %v724_v49 = vadd.f32 %v1042_v47, %v723_v48 }
 0x261   :  { %v1203_v50 = vpop.f32.mrf.mxu1 }
 0x262   :  { %v449_v36 = vmul.f32 0.125, %v448_v35  ;;  %v729_v51 = vmax.f32 %v724_v49, 0.0  ;;  %v598_v50 = vld [vmem:[%s1765_s13] sm:$0x1] }
 0x263   :  { %v726_v52 = vpop.f32.mrf.mxu1 }
 0x264   :  { %v451_v37 = vadd.f32 1e-05, %v449_v36  ;;  %v730_v53 = vrot.slane %v729_v51, 4 }
 0x265   :  { %v1204_v54 = vpop.f32.mrf.mxu1 }
 0x266   :  { %1306 = vrsqrt.f32 %v451_v37  ;;  %v731_v55 = vadd.f32 %v730_v53, %v729_v51  ;;  %v1041_v54 = vld [vmem:[%s1766_s14] ss:$0 sm:$0xff] }
 0x268   :  { %v732_v56 = vrot.slane %v731_v55, 2 }
 0x26a   :  { %v733_v57 = vadd.f32 %v732_v56, %v731_v55 }
 0x26c   :  { %v734_v58 = vrot.slane %v733_v57, 1 }
 0x26e   :  { %v735_v59 = vadd.f32 %v734_v58, %v733_v57 }
 0x270   :  { %v736_v60 = vmul.f32 0.125, %v735_v59 }
 0x272   :  { %v737_v61 = vsub.f32 %v729_v51, %v736_v60 }
 0x273   :  { %v1307_v39 = vpop.eup %1306 }
 0x274   :  { %v453_v40 = vmul.f32 %v1307_v39, %v450_v38  ;;  %v738_v62 = vmul.f32 %v737_v61, %v737_v61 }
 0x276   :  { %v458_v41 = vrot.slane %v453_v40, %v1671_v46  ;;  %v739_v63 = vrot.slane %v738_v62, 4 }
 0x278   :  { %v460_v43 = vmul.f32 %v458_v41, %v441_v28  ;;  %v740_v0 = vadd.f32 %v739_v63, %v738_v62  ;;  %v1068_v63 = vld [vmem:[%s1773_s21] ss:$0 sm:$0xff] }
 0x27a   :  { %v468_v44 = vadd.f32 %v1031_v42, %v460_v43  ;;  %v741_v2 = vrot.slane %v740_v0, 2 }
 0x27c   :  { %v469_v45 = vpack.c.bf16 %v468_v44, %v468_v44  ;;  %v742_v3 = vadd.f32 %v741_v2, %v740_v0 }
 0x27e   :  { %1182 = vmatmul.mubr.bf16.vlgmr.msra.gmra.mxu0 %v469_v45  ;;  %v743_v4 = vrot.slane %v742_v3, 1 }
 0x27f   :  { %1221 = vmatprep.mubr.msk.bf16.mxu0 %vm1470_vm0, %v1469_v1  ;;  %1206 = vmatpush3.bf16.msra.mxu0 %v1296_v18 }
 0x280   :  { %v744_v5 = vadd.f32 %v743_v4, %v742_v3  ;;  %1207 = vmatprep.subr.bf16.mxu0 %v1469_v1  ;;  %v1069_v4 = vld [vmem:[%s1774_s22] ss:$0 sm:$0xff] }
 0x282   :  { %v745_v6 = vmul.f32 0.125, %v744_v5 }
 0x283   :  { %1208 = vmatpush3.bf16.msra.mxu0 %v1297_v19 }
 0x284   :  { %v747_v7 = vadd.f32 1e-05, %v745_v6  ;;  %1209 = vmatprep.subr.bf16.mxu0 %v1469_v1 }
 0x286   :  { %1308 = vrsqrt.f32 %v747_v7 }
 0x287   :  { %1210 = vmatpush3.bf16.msra.mxu0 %v1298_v20 }
 0x288   :  { %1211 = vmatprep.subr.bf16.mxu0 %v1469_v1 }
 0x28b   :  { %1212 = vmatpush3.bf16.msra.mxu0 %v1299_v21 }
 0x28c   :  { %1213 = vmatprep.subr.bf16.mxu0 %v1469_v1 }
 0x28f   :  { %1214 = vmatpush3.bf16.msra.mxu0 %v1300_v22 }
 0x290   :  { %1215 = vmatprep.subr.bf16.mxu0 %v1469_v1 }
 0x293   :  { %v1309_v9 = vpop.eup %1308  ;;  %1216 = vmatpush3.bf16.msra.mxu0 %v1301_v23 }
 0x294   :  { %v749_v10 = vmul.f32 %v1309_v9, %v746_v8  ;;  %1217 = vmatprep.subr.bf16.mxu0 %v1469_v1  ;;  %v1070_v8 = vld [vmem:[#allocation4] ss:$0 sm:$0xff] }
 0x296   :  { %v754_v12 = vrot.slane %v749_v10, %v1671_v46 }
 0x297   :  { %1218 = vmatpush3.bf16.msra.mxu0 %v1302_v24 }
 0x298   :  { %v756_v13 = vmul.f32 %v754_v12, %v737_v61  ;;  %1219 = vmatprep.subr.bf16.mxu0 %v1469_v1 }
 0x29a   :  { %v764_v16 = vadd.f32 %v1051_v15, %v756_v13 }
 0x29b   :  { %1220 = vmatpush3.bf16.msra.mxu0 %v1303_v25 }
 0x29c   :  { %v765_v17 = vpack.c.bf16 %v764_v16, %v764_v16 }
 0x29e   :  { %1242 = vmatmul.mubr.bf16.vlgmr.msra.gmra.mxu1 %v765_v17 }
 0x33e   :  { %v575_v27 = vpop.f32.mrf.mxu0 }
 0x33f   :  { %v576_v28 = vadd.f32 %v1032_v26, %v575_v27 }
 0x340   :  { %v1183_v29 = vpop.f32.mrf.mxu0 }
 0x341   :  { %v581_v30 = vmax.f32 %v576_v28, 0.0 }
 0x342   :  { %v578_v31 = vpop.f32.mrf.mxu0 }
 0x343   :  { %v582_v32 = vrot.slane %v581_v30, 4 }
 0x344   :  { %v1184_v33 = vpop.f32.mrf.mxu0 }
 0x345   :  { %v583_v34 = vadd.f32 %v582_v32, %v581_v30 }
 0x347   :  { %v584_v35 = vrot.slane %v583_v34, 2 }
 0x349   :  { %v585_v36 = vadd.f32 %v584_v35, %v583_v34 }
 0x34b   :  { %v586_v37 = vrot.slane %v585_v36, 1 }
 0x34d   :  { %v587_v38 = vadd.f32 %v586_v37, %v585_v36 }
 0x34f   :  { %v588_v39 = vmul.f32 0.125, %v587_v38 }
 0x351   :  { %v589_v1 = vsub.f32 %v581_v30, %v588_v39 }
 0x353   :  { %v590_v40 = vmul.f32 %v589_v1, %v589_v1 }
 0x355   :  { %v591_v41 = vrot.slane %v590_v40, 4 }
 0x357   :  { %v592_v42 = vadd.f32 %v591_v41, %v590_v40 }
 0x359   :  { %v593_v43 = vrot.slane %v592_v42, 2 }
 0x35b   :  { %v594_v44 = vadd.f32 %v593_v43, %v592_v42 }
 0x35d   :  { %v595_v45 = vrot.slane %v594_v44, 1 }
 0x35e   :  { %v969_v58 = vpop.f32.mrf.mxu1 }
 0x35f   :  { %v596_v47 = vadd.f32 %v595_v45, %v594_v44 }
 0x360   :  { %v1243_v59 = vpop.f32.mrf.mxu1 }
 0x361   :  { %v597_v48 = vmul.f32 0.125, %v596_v47 }
 0x362   :  { %v972_v60 = vpop.f32.mrf.mxu1 }
 0x363   :  { %v599_v49 = vadd.f32 1e-05, %v597_v48 }
 0x364   :  { %v1244_v61 = vpop.f32.mrf.mxu1 }
 0x365   :  { %1310 = vrsqrt.f32 %v599_v49 }
 0x372   :  { %v1311_v51 = vpop.eup %1310 }
 0x373   :  { %v601_v52 = vmul.f32 %v1311_v51, %v598_v50 }
 0x375   :  { %v606_v53 = vrot.slane %v601_v52, %v1671_v46 }
 0x377   :  { %v608_v55 = vmul.f32 %v606_v53, %v589_v1 }
 0x379   :  { %v616_v56 = vadd.f32 %v1041_v54, %v608_v55 }
 0x37b   :  { %v782_v57 = vpack.c.bf16 %v616_v56, %v616_v56 }
 0x37d   :  { %1222 = vmatmul.mubr.bf16.vlgmr.msra.gmra.mxu0 %v782_v57 }
 0x43d   :  { %v881_v62 = vpop.f32.mrf.mxu0 }
 0x43e   :  { %v970_v0 = vadd.f32 %v969_v58, %v881_v62 }
 0x43f   :  { %v1223_v2 = vpop.f32.mrf.mxu0 }
 0x440   :  { %v982_v46 = vadd.f32 %v1068_v63, %v970_v0 }
 0x441   :  { %v884_v3 = vpop.f32.mrf.mxu0 }
 0x442   :  { %v983_v5 = vmax.f32 %v982_v46, 0.0 }
 0x443   :  { %v1224_v6 = vpop.f32.mrf.mxu0 }
 0x444   :  { %v991_v7 = vmul.f32 %v1069_v4, %v983_v5 }
 0x446   :  { %992 = vadd.xlane.f32.xlu0 %v991_v7 }
 0x4cf   :  { %v993_v9 = vpop.xlane.xlu0 %992 }
 0x4d0   :  { %v1001_v10 = vadd.f32 %v1070_v8, %v993_v9 }
 0x4d2   :  { %1003 = vst.msk [vmem:[%s1776_s24] sm:$0xff] %vm1002_vm1, %v1001_v10 }
 0x4d3   :  { %1008 = vsyncpa [#allocation6], 1 }
 0x4d4   :  { %1009 = vsyncpa [#allocation8], 1 }
 0x4d5   :  { %1010 = vsyncpa [#allocation11], 1 }
 0x4d6   :  { %1011 = vsyncpa [#allocation14], 1 }

</bundles_post_ra>
